<compile_context>
chip_gen: v6e
topology: v6e:2x2x1
jax: 0.10.0
libtpu: 0.0.40
codegen_flags: <defaults>
</compile_context>

<pallas_src>
import functools
import math

import jax
import jax.numpy as jnp
from jax.experimental import pallas as pl
from jax.experimental.pallas import tpu as pltpu


def _round_up(a, b):
    return ((a + b - 1) // b) * b


def _rmsnorm_kernel(x_ref, w_ref, o_ref, *, inv_d, eps):
    """Plain path: one logical row per kernel row (d_model on the lane axis)."""
    x = x_ref[...].astype(jnp.float32)                      # (tm, D)
    w = w_ref[...].astype(jnp.float32)                      # (1, D), resident
    ms = jnp.sum(x * x, axis=-1, keepdims=True) * inv_d     # XLU cross-lane reduce
    inv = jax.lax.rsqrt(ms + eps)                           # EUP
    # TODO(synk): if profiling on v7x shows the VPU binding for 16-bit inputs,
    # do the final multiply in the input dtype instead of f32.
    o_ref[...] = (x * inv * w).astype(o_ref.dtype)


def _rmsnorm_folded_kernel(x_ref, w_ref, seg_ref, o_ref, *, inv_d, eps):
    """Folded path for d_model < 128: k logical rows packed per kernel row so
    the lane axis is 128-wide (no masked partial stores).  Per-logical-row
    sums of squares are computed with a (128,128) block-diagonal matmul on
    the MXU.  The f32 squares are split into two bf16 pieces so the matmul
    runs as 2 native bf16 passes (seg is exact in bf16), keeping the MXU well
    under the HBM roofline on all chip generations."""
    x = x_ref[...].astype(jnp.float32)                      # (tm, k*D)
    w = w_ref[...].astype(jnp.float32)                      # (1, k*D) tiled weight
    seg = seg_ref[...]                                      # (k*D, k*D) bf16 block-diag
    sq = x * x
    sq_hi = sq.astype(jnp.bfloat16)
    sq_lo = (sq - sq_hi.astype(jnp.float32)).astype(jnp.bfloat16)
    row_sum = (jnp.dot(sq_hi, seg, preferred_element_type=jnp.float32)
               + jnp.dot(sq_lo, seg, preferred_element_type=jnp.float32))
    inv = jax.lax.rsqrt(row_sum * inv_d + eps)
    o_ref[...] = (x * inv * w).astype(o_ref.dtype)


def rmsnorm(x, weight, eps=1e-5):
    """x: (..., d_model), weight: (d_model,). Returns same shape/dtype as x."""
    orig_shape = x.shape
    d = orig_shape[-1]
    rows = int(math.prod(orig_shape[:-1]))            # prod(()) == 1 for 1-D x
    x2 = x.reshape(rows, d)

    itemsize = jnp.dtype(x.dtype).itemsize
    sub = max(8, 32 // itemsize)                      # sublane multiple for dtype

    # Fold k logical rows per kernel row when d_model is narrower than a vreg
    # and the fold needs no padding (rows divisible by k).
    k = 128 // d if (d < 128 and 128 % d == 0) else 1
    fold = (k > 1) and (rows % k == 0) and rows > 0
    if not fold:
        k = 1
    d_eff = k * d
    rows_eff = rows // k

    # --- tile size selection -------------------------------------------------
    # Budget on the f32 in-kernel working set so bf16/fp8 inputs do not blow
    # up the footprint (kernel upcasts the whole tile).  2 MiB for the folded
    # path (extra hi/lo temporaries), 4 MiB otherwise; with double-buffered
    # in/out blocks this stays comfortably under the 32 MiB scoped VMEM limit
    # (safe on v7x's 64 MiB physical VMEM).
    target_f32_block_bytes = (2 if fold else 4) * 1024 * 1024
    tm_budget = max(sub, (target_f32_block_bytes // (d_eff * 4)) // sub * sub)

    # Aim for >= MIN_STEPS grid steps on large inputs (>= 4 per TC under v7x
    # megacore) so input/output DMAs overlap with compute, but do not shrink
    # tiles below ~512 rows (per-step overhead / DMA-efficiency plateau).
    MIN_STEPS = 8
    tm_steps = _round_up(-(-rows_eff // MIN_STEPS), sub)
    tm_floor = min(512, _round_up(rows_eff, sub))
    tm = min(tm_budget, max(tm_steps, tm_floor))
    tm = min(tm, _round_up(rows_eff, sub))

    grid = (pl.cdiv(rows_eff, tm),)                   # ragged last block is fine

    xk = x2.reshape(rows_eff, d_eff) if fold else x2  # free (contiguous reshape)
    w_eff = (jnp.tile(weight, k) if k > 1 else weight).reshape(1, d_eff)

    x_spec = pl.BlockSpec((tm, d_eff), lambda i: (i, 0))
    w_spec = pl.BlockSpec((1, d_eff), lambda i: (0, 0))      # resident across steps
    out_spec = pl.BlockSpec((tm, d_eff), lambda i: (i, 0))

    compiler_params = pltpu.CompilerParams(
        dimension_semantics=("parallel",),
        vmem_limit_bytes=32 * 1024 * 1024,
    )

    if fold:
        seg_idx = jnp.arange(d_eff, dtype=jnp.int32) // d
        seg = (seg_idx[:, None] == seg_idx[None, :]).astype(jnp.bfloat16)
        kernel = functools.partial(
            _rmsnorm_folded_kernel, inv_d=1.0 / d, eps=float(eps))
        out = pl.pallas_call(
            kernel,
            out_shape=jax.ShapeDtypeStruct((rows_eff, d_eff), x.dtype),
            grid=grid,
            in_specs=[x_spec, w_spec,
                      pl.BlockSpec((d_eff, d_eff), lambda i: (0, 0))],
            out_specs=out_spec,
            compiler_params=compiler_params,
        )(xk, w_eff, seg)
    else:
        kernel = functools.partial(
            _rmsnorm_kernel, inv_d=1.0 / d, eps=float(eps))
        out = pl.pallas_call(
            kernel,
            out_shape=jax.ShapeDtypeStruct((rows_eff, d_eff), x.dtype),
            grid=grid,
            in_specs=[x_spec, w_spec],
            out_specs=out_spec,
            compiler_params=compiler_params,
        )(xk, w_eff)

    return out.reshape(orig_shape)


def residual_block(x, norm_weight, eps=1e-5):
    """Forward of the PyTorch ResidualBlock, as far as the provided spec allows."""
    x1 = rmsnorm(x, norm_weight, eps)
    # TODO(synk): Mamba2Block (self.mixer) is not defined in the provided spec;
    # the `mixer(x1) + x1` residual path cannot be implemented without it.  When
    # it lands, fuse the residual add into the mixer kernel so x1 is not
    # round-tripped through HBM.
    return x1


if __name__ == "__main__":
    key = jax.random.PRNGKey(0)
    k1, k2, k3, k4, k5 = jax.random.split(key, 5)
    eps = 1e-5

    def ref_rmsnorm(x, w, eps):
        xf = x.astype(jnp.float32)
        wf = w.astype(jnp.float32)
        out = xf * jax.lax.rsqrt(jnp.mean(xf * xf, axis=-1, keepdims=True) + eps) * wf
        return out.astype(x.dtype)

    # 1) Module-consistent shape: d_model=32 (folded lane-dense path), ones weight.
    x = jax.random.normal(k1, (2, 8, 32), dtype=jnp.float32)
    w = jnp.ones((32,), dtype=jnp.float32)       # PyTorch init: ones
    out = residual_block(x, w, eps=eps)
    jax.block_until_ready(out)
    assert out.shape == x.shape and out.dtype == x.dtype
    assert jnp.allclose(out, ref_rmsnorm(x, w, eps), atol=5e-5, rtol=5e-5)

    # 2) Plain path: d_model >= 128, random weight, single-step grid.
    x2 = jax.random.normal(k2, (2, 16, 256), dtype=jnp.float32)
    w2 = jax.random.normal(k3, (256,), dtype=jnp.float32)
    out2 = rmsnorm(x2, w2, eps=eps)
    jax.block_until_ready(out2)
    assert jnp.allclose(out2, ref_rmsnorm(x2, w2, eps), atol=2e-5, rtol=2e-5)

    # 3) Multi-step grid with a ragged last row-block (no wrapper padding), bf16.
    x3 = jax.random.normal(k4, (4, 300, 256), dtype=jnp.bfloat16)
    w3 = (1.0 + 0.1 * jax.random.normal(k5, (256,), dtype=jnp.float32)).astype(jnp.bfloat16)
    out3 = rmsnorm(x3, w3, eps=eps)
    jax.block_until_ready(out3)
    assert out3.shape == x3.shape and out3.dtype == jnp.bfloat16
    assert jnp.allclose(out3.astype(jnp.float32),
                        ref_rmsnorm(x3, w3, eps).astype(jnp.float32),
                        atol=2e-2, rtol=2e-2)

    # 4) d_model < 128 but fold disabled (rows % k != 0) -> plain fallback.
    x4 = jax.random.normal(k1, (2, 9, 32), dtype=jnp.float32)
    out4 = rmsnorm(x4, w, eps=eps)
    jax.block_until_ready(out4)
    assert jnp.allclose(out4, ref_rmsnorm(x4, w, eps), atol=2e-5, rtol=2e-5)

    print("KERNEL_OK")
</pallas_src>

<mosaic_0001>
module attributes {stable_mosaic.version = 11 : i64} {
  func.func @_rmsnorm_folded_kernel(%arg0: i32, %arg1: memref<8x128xf32, #tpu.memory_space<vmem>>, %arg2: memref<1x128xf32, #tpu.memory_space<vmem>>, %arg3: memref<128x128xbf16, #tpu.memory_space<vmem>>, %arg4: memref<8x128xf32, #tpu.memory_space<vmem>>) attributes {dimension_semantics = [#tpu.dimension_semantics<parallel>], iteration_bounds = array<i64: 1>, scalar_prefetch = 0 : i64, scratch_operands = 0 : i64, tpu.core_type = #tpu.core_type<tc>, window_params = [{transform_indices = @transform_0, window_bounds = array<i64: 8, 128>}, {pipeline_mode = #tpu.pipeline_mode<synchronous>, transform_indices = @transform_1, window_bounds = array<i64: 1, 128>}, {pipeline_mode = #tpu.pipeline_mode<synchronous>, transform_indices = @transform_2, window_bounds = array<i64: 128, 128>}, {transform_indices = @transform_3, window_bounds = array<i64: 8, 128>}]} {
    %c0 = arith.constant 0 : index
    %c0_0 = arith.constant 0 : index
    %0 = vector.load %arg1[%c0, %c0_0] : memref<8x128xf32, #tpu.memory_space<vmem>>, vector<8x128xf32>
    %c0_1 = arith.constant 0 : index
    %c0_2 = arith.constant 0 : index
    %1 = vector.load %arg2[%c0_1, %c0_2] : memref<1x128xf32, #tpu.memory_space<vmem>>, vector<1x128xf32>
    %c0_3 = arith.constant 0 : index
    %c0_4 = arith.constant 0 : index
    %2 = vector.load %arg3[%c0_3, %c0_4] : memref<128x128xbf16, #tpu.memory_space<vmem>>, vector<128x128xbf16>
    %3 = arith.mulf %0, %0 : vector<8x128xf32>
    %4 = arith.truncf %3 : vector<8x128xf32> to vector<8x128xbf16>
    %5 = arith.extf %4 : vector<8x128xbf16> to vector<8x128xf32>
    %6 = arith.subf %3, %5 : vector<8x128xf32>
    %7 = arith.truncf %6 : vector<8x128xf32> to vector<8x128xbf16>
    %cst = arith.constant dense<0.000000e+00> : vector<8x128xf32>
    %8 = tpu.matmul %4, %2, %cst {dimension_numbers = #tpu.dot_dimension_numbers<[1], [0], [0], [1], [0, 0, 1, 1], [], []>} : vector<8x128xbf16>, vector<128x128xbf16>, vector<8x128xf32> -> vector<8x128xf32>
    %cst_5 = arith.constant dense<0.000000e+00> : vector<8x128xf32>
    %9 = tpu.matmul %7, %2, %cst_5 {dimension_numbers = #tpu.dot_dimension_numbers<[1], [0], [0], [1], [0, 0, 1, 1], [], []>} : vector<8x128xbf16>, vector<128x128xbf16>, vector<8x128xf32> -> vector<8x128xf32>
    %10 = arith.addf %8, %9 : vector<8x128xf32>
    %cst_6 = arith.constant 3.125000e-02 : f32
    %11 = vector.broadcast %cst_6 : f32 to vector<8x128xf32>
    %12 = arith.mulf %10, %11 : vector<8x128xf32>
    %cst_7 = arith.constant 9.99999974E-6 : f32
    %13 = vector.broadcast %cst_7 : f32 to vector<8x128xf32>
    %14 = arith.addf %12, %13 : vector<8x128xf32>
    %15 = math.rsqrt %14 : vector<8x128xf32>
    %16 = arith.mulf %0, %15 : vector<8x128xf32>
    %17 = vector.broadcast %1 : vector<1x128xf32> to vector<8x128xf32>
    %18 = arith.mulf %16, %17 : vector<8x128xf32>
    %c0_8 = arith.constant 0 : index
    %c0_9 = arith.constant 0 : index
    %19 = vector.load %arg4[%c0_8, %c0_9] : memref<8x128xf32, #tpu.memory_space<vmem>>, vector<8x128xf32>
    tpu.vector_store %arg4[%c0_8, %c0_9], %18 {strides = array<i32>} : memref<8x128xf32, #tpu.memory_space<vmem>>, vector<8x128xf32>,
    return
  }
  func.func @transform_0(%arg0: i32) -> (i32, i32) {
    %c0_i32 = arith.constant 0 : i32
    %c0_i32_0 = arith.constant 0 : i32
    return %arg0, %c0_i32 : i32, i32
  }
  func.func @transform_1(%arg0: i32) -> (i32, i32) {
    %c0_i32 = arith.constant 0 : i32
    %c0_i32_0 = arith.constant 0 : i32
    %c0_i32_1 = arith.constant 0 : i32
    return %c0_i32, %c0_i32_0 : i32, i32
  }
  func.func @transform_2(%arg0: i32) -> (i32, i32) {
    %c0_i32 = arith.constant 0 : i32
    %c0_i32_0 = arith.constant 0 : i32
    %c0_i32_1 = arith.constant 0 : i32
    return %c0_i32, %c0_i32_0 : i32, i32
  }
  func.func @transform_3(%arg0: i32) -> (i32, i32) {
    %c0_i32 = arith.constant 0 : i32
    %c0_i32_0 = arith.constant 0 : i32
    return %arg0, %c0_i32 : i32, i32
  }
}

</mosaic_0001>

<bundles_post_ra>
// kernel: tpu_custom_call.1
= control target key start
LH: loop header
LB: loop body
LE: loop exit
PB: predicated region body
PF: predicated region fallthrough
CT: control target
= control target key end

     0   :  { %8 = vsyncpa [#allocation3], 0  ;;  %s423_s0 = inlined_call_operand.hbm [shape: f32[4,128], index: 0, kind: input, shape index: {}]   ;;  %s424_s1 = inlined_call_operand.vmem [shape: f32[1,128], index: 1, kind: input, shape index: {}]   ;;  %s425_s2 = inlined_call_operand.hbm [shape: bf16[128,128], index: 2, kind: input, shape index: {}]   ;;  %s426_s3 = inlined_call_operand.hbm [shape: f32[4,128], index: 3, kind: output, shape index: {}]  }
   0x1   :  { %9 = vsyncpa [#allocation6], 0 }
   0x2   :  { %10 = vsyncpa [#allocation4], 0 }
   0x3   :  { %15 = vsyncadd [#allocation3], 64  ;;  %s375_s12 = smov [#allocation2]  }
   0x4   :  { %s16_s13 = sshll.u32 %s375_s12, 4  ;;  %s17_s13 = int_to_ptr.vmem [resolvable:$true] %s16_s13 }
   0x5   :  { %s317_s14 = scalar_lea.vmem %s17_s13, 64  ;;  %s321_s15 = scalar_lea.vmem %s17_s13, 128 }
   0x6   :  { %p318_p0 = scmp.ne.s32.totalorder %s17_s13, %s317_s14  ;;  %p322_p1 = scmp.lt.s32.totalorder %s17_s13, %s17_s13 }
   0x7   :  { %p323_p2 = scmp.lt.s32.totalorder %s321_s15, %s317_s14 }
   0x9   :  { %p324_p3 = por %p323_p2, %p322_p1 }
   0xb   :  { %p325_p4 = pnand %p324_p3, %p318_p0 }
   0xd   :  { %328 = shalt.err (!%p325_p4)
}
   0xe   :  { %s376_s16 = smov 64   ;;  %s377_s17 = smov 4  }
   0xf   :  { %22 = dma.hbm_to_vmem [thread:$0]  %s423_s0, 64, %s17_s13, [#allocation3], %s376_s16, %s376_s16, %s377_s17  }
  0x10   :  { %s378_s20 = smov [#allocation5]  }
  0x11   :  { %s30_s21 = sshll.u32 %s378_s20, 4  ;;  %s31_s21 = int_to_ptr.vmem [resolvable:$true] %s30_s21 }
  0x12   :  { %s337_s22 = scalar_lea.vmem %s31_s21, 1024  ;;  %p342_p6 = scmp.lt.s32.totalorder %s31_s21, %s31_s21 }
  0x13   :  { %p338_p5 = scmp.ne.s32.totalorder %s31_s21, %s337_s22  ;;  %p343_p7 = scmp.lt.s32.totalorder %s337_s22, %s337_s22 }
  0x15   :  { %p344_p8 = por %p343_p7, %p342_p6 }
  0x17   :  { %p345_p9 = pnand %p344_p8, %p338_p5 }
  0x19   :  { %348 = shalt.err (!%p345_p9)
}
  0x1a   :  { %36 = dma.hbm_to_vmem [thread:$0]  %s425_s2, 1024, %s31_s21, [#allocation6], %s376_s16, %s376_s16, %s377_s17  }
  0x1b   :  { %369 = dma.done.wait [#allocation3], 128  }
  0x1c   :  { %370 = vsyncadd [#allocation3], 4294967168 }
  0x1d   :  { %371 = dma.done.wait [#allocation6], 1024  }
  0x1e   :  { %372 = vsyncadd [#allocation6], 4294966272  ;;  %v379_v0 = vmov 0.0   ;;  %vm380_vm0 = vmmov 0   ;;  %v299_v1 = vld [vmem:[#allocation5 + $0x38] sm:$0xff]   ;;  %v300_v2 = vld [vmem:[#allocation5 + $0x30] sm:$0xff]  }
  0x1f   :  { %252 = vmatprep.subr.bf16.mxu0 %v379_v0  ;;  %272 = vmatprep.subr.bf16.mxu1 %v379_v0  ;;  %v301_v3 = vld [vmem:[#allocation5 + $0x28] sm:$0xff]   ;;  %v302_v4 = vld [vmem:[#allocation5 + $0x20] sm:$0xff]   ;;  %v44_v5 = vld [vmem:[#allocation2] sm:$0xff] }
  0x20   :  { %268 = vmatprep.mubr.msk.bf16.mxu0 %vm380_vm0, %v379_v0  ;;  %288 = vmatprep.mubr.msk.bf16.mxu1 %vm380_vm0, %v379_v0  ;;  %v62_v6 = vmul.f32 %v44_v5, %v44_v5  ;;  %v303_v7 = vld [vmem:[#allocation5 + $0x18] sm:$0xff]   ;;  %v304_v9 = vld [vmem:[#allocation5 + $0x10] sm:$0xff]   ;;  %v305_v11 = vld [vmem:[#allocation5 + $0x8] sm:$0xff]  }
  0x21   :  { %253 = vmatpush3.bf16.msra.mxu0 %v299_v1  ;;  %273 = vmatpush3.bf16.msra.mxu1 %v299_v1  ;;  %v306_v13 = vld [vmem:[#allocation5] sm:$0xff]   ;;  %v233_v27 = vld [vmem:[%s424_s1] ss:$0 sm:$0xff] }
  0x22   :  { %254 = vmatprep.subr.bf16.mxu0 %v379_v0  ;;  %274 = vmatprep.subr.bf16.mxu1 %v379_v0  ;;  %v63_v8 = vpack.c.bf16 %v62_v6, %v62_v6 }
  0x24   :  { %v64_v10 = vunpack.c.l.bf16 %v63_v8 }
  0x25   :  { %255 = vmatpush3.bf16.msra.mxu0 %v300_v2  ;;  %275 = vmatpush3.bf16.msra.mxu1 %v300_v2 }
  0x26   :  { %256 = vmatprep.subr.bf16.mxu0 %v379_v0  ;;  %276 = vmatprep.subr.bf16.mxu1 %v379_v0  ;;  %v65_v12 = vsub.f32 %v62_v6, %v64_v10 }
  0x28   :  { %v66_v14 = vpack.c.bf16 %v65_v12, %v65_v12 }
  0x29   :  { %257 = vmatpush3.bf16.msra.mxu0 %v301_v3  ;;  %277 = vmatpush3.bf16.msra.mxu1 %v301_v3 }
  0x2a   :  { %258 = vmatprep.subr.bf16.mxu0 %v379_v0  ;;  %278 = vmatprep.subr.bf16.mxu1 %v379_v0 }
  0x2d   :  { %259 = vmatpush3.bf16.msra.mxu0 %v302_v4  ;;  %279 = vmatpush3.bf16.msra.mxu1 %v302_v4 }
  0x2e   :  { %260 = vmatprep.subr.bf16.mxu0 %v379_v0  ;;  %280 = vmatprep.subr.bf16.mxu1 %v379_v0 }
  0x31   :  { %261 = vmatpush3.bf16.msra.mxu0 %v303_v7  ;;  %281 = vmatpush3.bf16.msra.mxu1 %v303_v7 }
  0x32   :  { %262 = vmatprep.subr.bf16.mxu0 %v379_v0  ;;  %282 = vmatprep.subr.bf16.mxu1 %v379_v0 }
  0x35   :  { %263 = vmatpush3.bf16.msra.mxu0 %v304_v9  ;;  %283 = vmatpush3.bf16.msra.mxu1 %v304_v9 }
  0x36   :  { %264 = vmatprep.subr.bf16.mxu0 %v379_v0  ;;  %284 = vmatprep.subr.bf16.mxu1 %v379_v0 }
  0x39   :  { %265 = vmatpush3.bf16.msra.mxu0 %v305_v11  ;;  %285 = vmatpush3.bf16.msra.mxu1 %v305_v11 }
  0x3a   :  { %266 = vmatprep.subr.bf16.mxu0 %v379_v0  ;;  %286 = vmatprep.subr.bf16.mxu1 %v379_v0 }
  0x3d   :  { %267 = vmatpush3.bf16.msra.mxu0 %v306_v13  ;;  %287 = vmatpush3.bf16.msra.mxu1 %v306_v13 }
  0x40   :  { %269 = vmatmul.mubr.bf16.vlgmr.msra.gmra.mxu0 %v66_v14  ;;  %289 = vmatmul.mubr.bf16.vlgmr.msra.gmra.mxu1 %v63_v8 }
 0x100   :  { %v149_v15 = vpop.f32.mrf.mxu0  ;;  %v189_v16 = vpop.f32.mrf.mxu1 }
 0x101   :  { %v190_v17 = vadd.f32 %v189_v16, %v149_v15 }
 0x102   :  { %v270_v18 = vpop.f32.mrf.mxu0  ;;  %v290_v19 = vpop.f32.mrf.mxu1 }
 0x103   :  { %v195_v20 = vmul.f32 0.03125, %v190_v17 }
 0x104   :  { %v152_v21 = vpop.f32.mrf.mxu0  ;;  %v192_v22 = vpop.f32.mrf.mxu1 }
 0x105   :  { %v196_v23 = vadd.f32 1e-05, %v195_v20 }
 0x106   :  { %v271_v24 = vpop.f32.mrf.mxu0  ;;  %v291_v25 = vpop.f32.mrf.mxu1 }
 0x107   :  { %307 = vrsqrt.f32 %v196_v23 }
 0x114   :  { %v308_v26 = vpop.eup %307 }
 0x115   :  { %v198_v28 = vmul.f32 %v308_v26, %v44_v5 }
 0x117   :  { %v205_v29 = vmul.f32 %v233_v27, %v198_v28 }
 0x119   :  { %206 = vst [vmem:[#allocation7] sm:$0xff] %v205_v29 }
 0x11a   :  { %211 = vsyncadd [#allocation4], 64  ;;  %s381_s25 = smov [#allocation7]  }
 0x11b   :  { %s212_s26 = sshll.u32 %s381_s25, 4  ;;  %s213_s26 = int_to_ptr.vmem [resolvable:$true] %s212_s26 }
 0x11c   :  { %s349_s27 = scalar_lea.vmem %s213_s26, 64  ;;  %s353_s28 = scalar_lea.vmem %s213_s26, 128 }
 0x11d   :  { %p350_p10 = scmp.ne.s32.totalorder %s213_s26, %s349_s27  ;;  %p354_p11 = scmp.lt.s32.totalorder %s213_s26, %s213_s26 }
 0x11e   :  { %p355_p12 = scmp.lt.s32.totalorder %s353_s28, %s349_s27 }
 0x120   :  { %p356_p13 = por %p355_p12, %p354_p11 }
 0x122   :  { %p357_p0 = pnand %p356_p13, %p350_p10 }
 0x124   :  { %360 = shalt.err (!%p357_p0)
}
 0x125   :  { %218 = dma.vmem_to_hbm [thread:$0]  %s213_s26, 64, %s426_s3, [#allocation4], %s376_s16, %s376_s16, %s377_s17  }
 0x126   :  { %373 = dma.done.wait [#allocation4], 128  }
 0x127   :  { %374 = vsyncadd [#allocation4], 4294967168 }
 0x128   :  { %222 = vsyncpa [#allocation3], 1 }
 0x129   :  { %223 = vsyncpa [#allocation6], 1 }
 0x12a   :  { %224 = vsyncpa [#allocation4], 1 }

</bundles_post_ra>
